<compile_context>
chip_gen: v5e
topology: v5e:2x2
jax: 0.10.0
libtpu: 0.0.40
codegen_flags: <defaults>
</compile_context>

<pallas_src>
import functools

import jax
import jax.numpy as jnp
from jax import lax
from jax.experimental import pallas as pl
from jax.experimental.pallas import tpu as pltpu

LN_EPS = 1e-5  # torch.nn.LayerNorm default eps


def _embeder_kernel(idx_ref, *refs, block_tokens, has_type, has_mask):
    """One grid step processes `block_tokens` tokens.

    Ref order: idx (SMEM prefetch), emb table (VMEM, resident),
    [type rows], [mask column], gamma, beta, out, gather scratch.
    """
    it = iter(refs)
    emb_ref = next(it)
    type_ref = next(it) if has_type else None
    mask_ref = next(it) if has_mask else None
    gamma_ref = next(it)
    beta_ref = next(it)
    out_ref = next(it)
    gath_ref = next(it)

    base = pl.program_id(0) * block_tokens

    # In-VMEM embedding gather: one dynamic (1, H) row copy per token.
    def gather_row(t, carry):
        row = idx_ref[base + t]
        gath_ref[pl.ds(t, 1), :] = emb_ref[pl.ds(row, 1), :].astype(jnp.float32)
        return carry

    lax.fori_loop(0, block_tokens, gather_row, 0)

    x = gath_ref[...]
    if has_type:
        x = x + type_ref[...].astype(jnp.float32)

    # LayerNorm over the hidden (lane) axis, biased variance like torch.
    mean = jnp.mean(x, axis=-1, keepdims=True)
    cent = x - mean
    var = jnp.mean(cent * cent, axis=-1, keepdims=True)
    y = cent * lax.rsqrt(var + LN_EPS)
    y = y * gamma_ref[...].astype(jnp.float32) + beta_ref[...].astype(jnp.float32)

    # Eval-mode dropout is the identity (see TODO at top of file).
    if has_mask:
        y = y * mask_ref[...]  # (T, 1) broadcast over (T, H)

    out_ref[...] = y.astype(out_ref.dtype)


def embeder_forward(input_idx, emb_table, gamma, beta,
                    type_embeding=None, input_mask=None, block_tokens=256):
    """JAX/Pallas equivalent of Embeder.forward (eval mode)."""
    B, S = input_idx.shape
    V, H = emb_table.shape
    N = B * S
    has_type = type_embeding is not None
    has_mask = input_mask is not None

    # Tile size: multiple of 8 sublanes, shrink for tiny inputs.
    T = int(block_tokens)
    if N <= T:
        T = max(8, ((N + 7) // 8) * 8)
    assert T % 8 == 0
    n_blocks = pl.cdiv(N, T)
    N_pad = n_blocks * T
    pad = N_pad - N

    out_dtype = emb_table.dtype
    isz = jnp.dtype(emb_table.dtype).itemsize

    # --- flatten + pad inputs ------------------------------------------------
    idx_flat = input_idx.reshape(N).astype(jnp.int32)
    if pad:
        idx_flat = jnp.pad(idx_flat, (0, pad))  # pad with a valid index (0)

    in_specs = [
        # Embedding table, resident in VMEM (same block every step -> one DMA).
        pl.BlockSpec((V, H), lambda i, idx: (0, 0)),
    ]
    args = [emb_table]

    if has_type:
        type_flat = type_embeding.reshape(N, H)
        if pad:
            type_flat = jnp.pad(type_flat, ((0, pad), (0, 0)))
        in_specs.append(pl.BlockSpec((T, H), lambda i, idx: (i, 0)))
        args.append(type_flat)

    if has_mask:
        mask_flat = input_mask.reshape(N, 1).astype(jnp.float32)
        if pad:
            mask_flat = jnp.pad(mask_flat, ((0, pad), (0, 0)))
        in_specs.append(pl.BlockSpec((T, 1), lambda i, idx: (i, 0)))
        args.append(mask_flat)

    # LayerNorm affine params (constant block every step).
    in_specs += [pl.BlockSpec((1, H), lambda i, idx: (0, 0)),
                 pl.BlockSpec((1, H), lambda i, idx: (0, 0))]
    args += [gamma.reshape(1, H), beta.reshape(1, H)]

    # --- VMEM budget / compiler params --------------------------------------
    est = 2 * V * H * isz                      # resident table (conservative 2x)
    est += 2 * T * H * isz                     # double-buffered output tiles
    if has_type:
        est += 2 * T * H * jnp.dtype(type_flat.dtype).itemsize
    if has_mask:
        est += 2 * T * 128 * 4                 # (T, 1) pads to lane width
    est += T * H * 4                           # gather scratch (f32)
    est += 4 * 8 * H * 4                       # gamma / beta (sublane-padded)
    vmem_limit = min(max(int(1.5 * est) + (4 << 20), 32 << 20), 100 << 20)

    bytes_accessed = V * H * isz + N_pad * 4 + N_pad * H * isz
    if has_type:
        bytes_accessed += N_pad * H * jnp.dtype(type_flat.dtype).itemsize
    if has_mask:
        bytes_accessed += N_pad * 4
    cost = pl.CostEstimate(flops=8 * N_pad * H,
                           transcendentals=N_pad,
                           bytes_accessed=bytes_accessed)

    kernel = functools.partial(_embeder_kernel, block_tokens=T,
                               has_type=has_type, has_mask=has_mask)

    grid_spec = pltpu.PrefetchScalarGridSpec(
        num_scalar_prefetch=1,                 # token ids land in SMEM
        grid=(n_blocks,),
        in_specs=in_specs,
        out_specs=pl.BlockSpec((T, H), lambda i, idx: (i, 0)),
        scratch_shapes=[pltpu.VMEM((T, H), jnp.float32)],  # gathered rows
    )

    out = pl.pallas_call(
        kernel,
        out_shape=jax.ShapeDtypeStruct((N_pad, H), out_dtype),
        grid_spec=grid_spec,
        compiler_params=pltpu.CompilerParams(
            dimension_semantics=("parallel",),
            vmem_limit_bytes=vmem_limit),
        cost_estimate=cost,
    )(idx_flat, *args)

    return out[:N].reshape(B, S, H)


def embeder_reference(input_idx, emb_table, gamma, beta,
                      type_embeding=None, input_mask=None):
    """Pure-JAX reference (eval-mode dropout)."""
    e = emb_table[input_idx]
    if type_embeding is not None:
        e = e + type_embeding
    mean = jnp.mean(e, axis=-1, keepdims=True)
    var = jnp.mean((e - mean) ** 2, axis=-1, keepdims=True)
    y = (e - mean) * lax.rsqrt(var + LN_EPS) * gamma + beta
    if input_mask is not None:
        y = y * input_mask.astype(y.dtype)[..., None]
    return y


if __name__ == "__main__":
    # Small deterministic shapes: batch=2, seq=8, token_size=32, hidden=128.
    B, S, V, H = 2, 8, 32, 128
    key = jax.random.PRNGKey(0)
    k_emb, k_idx, k_type, k_mask = jax.random.split(key, 4)

    emb_table = jax.random.normal(k_emb, (V, H), dtype=jnp.float32)  # nn.Embedding weight
    gamma = jnp.ones((H,), jnp.float32)                              # nn.LayerNorm weight
    beta = jnp.zeros((H,), jnp.float32)                              # nn.LayerNorm bias

    input_idx = jax.random.randint(k_idx, (B, S), 0, V, dtype=jnp.int32)
    type_embeding = 0.1 * jax.random.normal(k_type, (B, S, H), dtype=jnp.float32)
    input_mask = jax.random.randint(k_mask, (B, S), 0, 2, dtype=jnp.int32)

    # Full variant (type embedding + mask), multi-step grid (T=8 -> 2 steps).
    out = embeder_forward(input_idx, emb_table, gamma, beta,
                          type_embeding=type_embeding, input_mask=input_mask,
                          block_tokens=8)
    out = jax.block_until_ready(out)
    ref = embeder_reference(input_idx, emb_table, gamma, beta,
                            type_embeding=type_embeding, input_mask=input_mask)
    assert out.shape == (B, S, H)
    assert jnp.allclose(out, ref, atol=1e-5, rtol=1e-5)

    # Bare variant (no type embedding, no mask): no synthetic zero streams.
    out2 = embeder_forward(input_idx, emb_table, gamma, beta)
    out2 = jax.block_until_ready(out2)
    ref2 = embeder_reference(input_idx, emb_table, gamma, beta)
    assert jnp.allclose(out2, ref2, atol=1e-5, rtol=1e-5)

    print("KERNEL_OK")
</pallas_src>

<mosaic_0001>
module attributes {stable_mosaic.version = 11 : i64} {
  func.func @_embeder_kernel(%arg0: i32, %arg1: memref<16xi32, #tpu.memory_space<smem>>, %arg2: memref<32x128xf32, #tpu.memory_space<vmem>>, %arg3: memref<8x128xf32, #tpu.memory_space<vmem>>, %arg4: memref<8x1xf32, #tpu.memory_space<vmem>>, %arg5: memref<1x128xf32, #tpu.memory_space<vmem>>, %arg6: memref<1x128xf32, #tpu.memory_space<vmem>>, %arg7: memref<8x128xf32, #tpu.memory_space<vmem>>, %arg8: memref<8x128xf32, #tpu.memory_space<vmem>>) attributes {dimension_semantics = [#tpu.dimension_semantics<parallel>], iteration_bounds = array<i64: 2>, scalar_prefetch = 1 : i64, scratch_operands = 1 : i64, tpu.core_type = #tpu.core_type<tc>, window_params = [{pipeline_mode = #tpu.pipeline_mode<synchronous>, transform_indices = @transform_0, window_bounds = array<i64: 32, 128>}, {transform_indices = @transform_1, window_bounds = array<i64: 8, 128>}, {transform_indices = @transform_2, window_bounds = array<i64: 8, 1>}, {pipeline_mode = #tpu.pipeline_mode<synchronous>, transform_indices = @transform_3, window_bounds = array<i64: 1, 128>}, {pipeline_mode = #tpu.pipeline_mode<synchronous>, transform_indices = @transform_4, window_bounds = array<i64: 1, 128>}, {transform_indices = @transform_5, window_bounds = array<i64: 8, 128>}]} {
    %c8_i32 = arith.constant 8 : i32
    %0 = arith.muli %arg0, %c8_i32 : i32
    %c0_i32 = arith.constant 0 : i32
    %c8_i32_0 = arith.constant 8 : i32
    %1 = arith.addi %c0_i32, %c8_i32_0 : i32
    %c1_i32 = arith.constant 1 : i32
    scf.for %arg9 = %c0_i32 to %1 step %c1_i32  : i32 {
      %31 = arith.addi %0, %arg9 : i32
      %32 = arith.index_cast %31 : i32 to index
      %33 = memref.load %arg1[%32] : memref<16xi32, #tpu.memory_space<smem>>
      %34 = arith.index_cast %33 : i32 to index
      %c0_17 = arith.constant 0 : index
      %35 = vector.load %arg2[%34, %c0_17] : memref<32x128xf32, #tpu.memory_space<vmem>>, vector<1x128xf32>
      %36 = arith.index_cast %arg9 : i32 to index
      %c0_18 = arith.constant 0 : index
      %37 = vector.load %arg8[%36, %c0_18] : memref<8x128xf32, #tpu.memory_space<vmem>>, vector<1x128xf32>
      tpu.vector_store %arg8[%36, %c0_18], %35 {strides = array<i32>} : memref<8x128xf32, #tpu.memory_space<vmem>>, vector<1x128xf32>,
    }
    %c8_i32_1 = arith.constant 8 : i32
    %c0 = arith.constant 0 : index
    %c0_2 = arith.constant 0 : index
    %2 = vector.load %arg8[%c0, %c0_2] : memref<8x128xf32, #tpu.memory_space<vmem>>, vector<8x128xf32>
    %c0_3 = arith.constant 0 : index
    %c0_4 = arith.constant 0 : index
    %3 = vector.load %arg3[%c0_3, %c0_4] : memref<8x128xf32, #tpu.memory_space<vmem>>, vector<8x128xf32>
    %4 = arith.addf %2, %3 : vector<8x128xf32>
    %cst = arith.constant dense<0.000000e+00> : vector<8xf32>
    %5 = vector.multi_reduction <add>, %4, %cst [1] : vector<8x128xf32> to vector<8xf32>
    %6 = vector.shape_cast %5 : vector<8xf32> to vector<8x1xf32>
    %cst_5 = arith.constant 1.280000e+02 : f32
    %7 = vector.broadcast %cst_5 : f32 to vector<8x1xf32>
    %8 = arith.divf %6, %7 : vector<8x1xf32>
    %9 = vector.broadcast %8 : vector<8x1xf32> to vector<8x128xf32>
    %10 = arith.subf %4, %9 : vector<8x128xf32>
    %11 = arith.mulf %10, %10 : vector<8x128xf32>
    %cst_6 = arith.constant dense<0.000000e+00> : vector<8xf32>
    %12 = vector.multi_reduction <add>, %11, %cst_6 [1] : vector<8x128xf32> to vector<8xf32>
    %13 = vector.shape_cast %12 : vector<8xf32> to vector<8x1xf32>
    %cst_7 = arith.constant 1.280000e+02 : f32
    %14 = vector.broadcast %cst_7 : f32 to vector<8x1xf32>
    %15 = arith.divf %13, %14 : vector<8x1xf32>
    %cst_8 = arith.constant 9.99999974E-6 : f32
    %16 = vector.broadcast %cst_8 : f32 to vector<8x1xf32>
    %17 = arith.addf %15, %16 : vector<8x1xf32>
    %18 = math.rsqrt %17 : vector<8x1xf32>
    %19 = vector.broadcast %18 : vector<8x1xf32> to vector<8x128xf32>
    %20 = arith.mulf %10, %19 : vector<8x128xf32>
    %c0_9 = arith.constant 0 : index
    %c0_10 = arith.constant 0 : index
    %21 = vector.load %arg5[%c0_9, %c0_10] : memref<1x128xf32, #tpu.memory_space<vmem>>, vector<1x128xf32>
    %22 = vector.broadcast %21 : vector<1x128xf32> to vector<8x128xf32>
    %23 = arith.mulf %20, %22 : vector<8x128xf32>
    %c0_11 = arith.constant 0 : index
    %c0_12 = arith.constant 0 : index
    %24 = vector.load %arg6[%c0_11, %c0_12] : memref<1x128xf32, #tpu.memory_space<vmem>>, vector<1x128xf32>
    %25 = vector.broadcast %24 : vector<1x128xf32> to vector<8x128xf32>
    %26 = arith.addf %23, %25 : vector<8x128xf32>
    %c0_13 = arith.constant 0 : index
    %c0_14 = arith.constant 0 : index
    %27 = vector.load %arg4[%c0_13, %c0_14] : memref<8x1xf32, #tpu.memory_space<vmem>>, vector<8x1xf32>
    %28 = vector.broadcast %27 : vector<8x1xf32> to vector<8x128xf32>
    %29 = arith.mulf %26, %28 : vector<8x128xf32>
    %c0_15 = arith.constant 0 : index
    %c0_16 = arith.constant 0 : index
    %30 = vector.load %arg7[%c0_15, %c0_16] : memref<8x128xf32, #tpu.memory_space<vmem>>, vector<8x128xf32>
    tpu.vector_store %arg7[%c0_15, %c0_16], %29 {strides = array<i32>} : memref<8x128xf32, #tpu.memory_space<vmem>>, vector<8x128xf32>,
    return
  }
  func.func @transform_0(%arg0: i32, %arg1: memref<16xi32, #tpu.memory_space<smem>>) -> (i32, i32) {
    %c0_i32 = arith.constant 0 : i32
    %c0_i32_0 = arith.constant 0 : i32
    %c0_i32_1 = arith.constant 0 : i32
    return %c0_i32, %c0_i32_0 : i32, i32
  }
  func.func @transform_1(%arg0: i32, %arg1: memref<16xi32, #tpu.memory_space<smem>>) -> (i32, i32) {
    %c0_i32 = arith.constant 0 : i32
    %c0_i32_0 = arith.constant 0 : i32
    return %arg0, %c0_i32 : i32, i32
  }
  func.func @transform_2(%arg0: i32, %arg1: memref<16xi32, #tpu.memory_space<smem>>) -> (i32, i32) {
    %c0_i32 = arith.constant 0 : i32
    %c0_i32_0 = arith.constant 0 : i32
    return %arg0, %c0_i32 : i32, i32
  }
  func.func @transform_3(%arg0: i32, %arg1: memref<16xi32, #tpu.memory_space<smem>>) -> (i32, i32) {
    %c0_i32 = arith.constant 0 : i32
    %c0_i32_0 = arith.constant 0 : i32
    %c0_i32_1 = arith.constant 0 : i32
    return %c0_i32, %c0_i32_0 : i32, i32
  }
  func.func @transform_4(%arg0: i32, %arg1: memref<16xi32, #tpu.memory_space<smem>>) -> (i32, i32) {
    %c0_i32 = arith.constant 0 : i32
    %c0_i32_0 = arith.constant 0 : i32
    %c0_i32_1 = arith.constant 0 : i32
    return %c0_i32, %c0_i32_0 : i32, i32
  }
  func.func @transform_5(%arg0: i32, %arg1: memref<16xi32, #tpu.memory_space<smem>>) -> (i32, i32) {
    %c0_i32 = arith.constant 0 : i32
    %c0_i32_0 = arith.constant 0 : i32
    return %arg0, %c0_i32 : i32, i32
  }
}

</mosaic_0001>

<bundles_post_ra>
// kernel: tpu_custom_call.1
= control target key start
LH: loop header
LB: loop body
LE: loop exit
PB: predicated region body
PF: predicated region fallthrough
CT: control target
= control target key end

     0   :  { %s635_s24 = smov [#allocation4]   ;;  %s798_s0 = inlined_call_operand.vmem [shape: s32[16], index: 0, kind: input, shape index: {}]   ;;  %s799_s1 = inlined_call_operand.hbm [shape: f32[32,128], index: 1, kind: input, shape index: {}]   ;;  %s800_s2 = inlined_call_operand.vmem [shape: f32[16,128], index: 2, kind: input, shape index: {}]   ;;  %s801_s3 = inlined_call_operand.vmem [shape: f32[16,1], index: 3, kind: input, shape index: {}]   ;;  %s802_s4 = inlined_call_operand.vmem [shape: f32[1,128], index: 4, kind: input, shape index: {}]   ;;  %s803_s5 = inlined_call_operand.vmem [shape: f32[1,128], index: 5, kind: input, shape index: {}]   ;;  %s804_s6 = inlined_call_operand.hbm [shape: f32[16,128], index: 6, kind: output, shape index: {}]  }
   0x1   :  { %s12_s23 = sshll.u32 %s798_s0, 4  ;;  %s13_s23 = int_to_ptr.vmem [resolvable:$true] %s12_s23 }
   0x2   :  { %15 = dma.vmem_to_smem %s13_s23, 16, %s635_s24, [#allocation3] }
   0x3   :  { %605 = dma.done.wait [#allocation3], 16 }
   0x4   :  { %606 = vsyncadd [#allocation3], 4294967280 }
   0x5   :  { %18 = sfence }
   0x6   :  { %19 = vsyncpa [#allocation6], 0 }
   0x7   :  { %20 = vsyncpa [#allocation7], 0 }
   0x8   :  { %22 = vsyncpa [#allocation7 + $0x1], 0  ;;  %s679_s25 = smov 0   ;;  %s681_s26 = smov 0  }
   0x9   :  { %s683_s27 = smov 0   ;;  %s685_s28 = smov 0  }
   0xa LB: > { %s700_s0 = sadd.s32 4294967295, %s629_s28   ;;  %s430_s29 = sadd.s32 4294967294, %s629_s28   ;;  %s629_s28 = sphi %s685_s28, %s810_s28   ;;  %s625_s27 = sphi %s683_s27, %s809_s27   ;;  %s621_s26 = sphi %s681_s26, %s808_s26   ;;  %s617_s25 = sphi %s679_s25, %s807_s25  }
   0xb   : > { %s704_s30 = sadd.s32 1, %s629_s28   ;;  %s150_s7 = sadd.s32 1, %s625_s27 }
   0xc   : > { %s147_s8 = ssub.s32 %s629_s28, %s704_s30  ;;  %p160_p0 = scmp.ne.s32.totalorder %s625_s27, %s621_s26 }
   0xd   : > { %p148_p1 = scmp.eq.s32.totalorder %s147_s8, 0  ;;  %p161_p2 = scmp.eq.s32.totalorder %s700_s0, 1 }
   0xe   : > { %p166_p3 = scmp.ne.s32.totalorder %s621_s26, %s617_s25  ;;  %p167_p4 = scmp.eq.s32.totalorder %s430_s29, 1 }
   0xf   : > { %s715_s9 = scalar_select %p148_p1, %s625_s27, %s150_s7  }
  0x10   : > { %p717_p5 = por %p161_p2, %p160_p0  ;;  %p721_p6 = por %p167_p4, %p166_p3 }
  0x11   : > { %p431_p7 = scmp.ge.s32.totalorder %s629_s28, 1  ;;  %p174_p8 = scmp.lt.s32.totalorder %s629_s28, 3 }
  0x12   : > { %p458_p9 = scmp.eq.s32.totalorder %s700_s0, 0  ;;  %s185_s14 = sshll.u32 %s799_s1, 4  ;;  %s186_s14 = int_to_ptr.hbm [resolvable:$true] %s185_s14 }
  0x13   : > { %p175_p10 = pnand %p431_p7, %p174_p8  ;;  %s636_s15 = smov [#allocation5]  }
  0x14   : > { %s187_s16 = sshll.u32 %s636_s15, 4  ;;  %s637_s17 = smov 128   ;;  %s188_s16 = int_to_ptr.vmem [resolvable:$true] %s187_s16 }
  0x15   : > { %p450_p11 = pneg %p175_p10  ;;  %s638_s18 = smov 8  }
  0x16   : > { %223 = sbr.rel (%p175_p10) target bundleno = 324 (0x144), region = 40 }
  0x17   : > { %p451_p12 = pnand %p458_p9, %p450_p11 }
  0x19   : > { %453 = dma.hbm_to_vmem [thread:$0]  (!%p451_p12), %s186_s14, 512, %s188_s16, [#allocation6], %s637_s17, %s637_s17, %s638_s18  }
  0x1b   : > { %608 = dma.done.wait (%p458_p9), [#allocation6], 512  }
  0x1c   : > { %610 = vsyncadd (%p458_p9), [#allocation6], 4294966784  ;;  %s252_s19 = sand.u32 1, %s621_s26   ;;  %p255_p13 = scmp.lt.s32.totalorder %s700_s0, 1 }
  0x1d   : > { %s741_s20 = sshll.u32 %s252_s19, 3  ;;  %s439_s21 = sshll.u32 %s700_s0, 3 }
  0x1e   : > { %s256_s22 = scalar_select %p255_p13, %s700_s0, 1 }
  0x1f   : > { %s254_s14 = scalar_lea.vmem [#allocation8], %s741_s20  ;;  %s631_s15 = smov 0  }
  0x20   : > { %s437_s23 = sshll.u32 %s256_s22, 3 }
  0x21   : > { %s258_s7 = scalar_lea.vmem %s800_s2, %s437_s23  ;;  %s262_s13 = scalar_lea.vmem %s801_s3, %s437_s23 }
  0x22 LB: >> { %s270_s16 = sadd.s32 %s633_s15, %s439_s21  ;;  %s274_s22 = scalar_lea.vmem [#allocation2], %s633_s15  ;;  %s633_s15 = sphi %s631_s15, %s269_s15  }
  0x23   : >> { %s271_s17 = sld [smem:[#allocation4 + %s270_s16]]  ;;  %s269_s15 = sadd.s32 1, %s633_s15  }
  0x24   : >> { %p266_p0 = scmp.ge.s32.totalorder %s269_s15, 8  }
  0x25   : > { %v277_v2 = vld [vmem:[%s258_s7] sm:$0xff] (%p266_p0)  ;;  %v639_v4 = vmov (%p266_p0), 128.0   ;;  %v640_v6 = vmov (%p266_p0), 0   ;;  %s337_s15 = sshll.u32 (%p266_p0), %s254_s14, 4  ;;  %s577_s23 = scalar_lea.hbm (%p266_p0), %s804_s6, 16  ;;  %s338_s15 = int_to_ptr.vmem [resolvable:$true] %s337_s15 }
  0x26   : > { %511 = vrcp.f32 (%p266_p0), %v639_v4  ;;  %v316_v5 = vld [vmem:[%s262_s13] sm:$0xff] (%p266_p0)  ;;  %507 = vset.pattern.permute.xlu1 (%p266_p0), %v640_v6  ;;  %508 = vset.pattern.permute.xlu0 (%p266_p0), %v640_v6  ;;  %s335_s13 = scalar_lea.hbm (%p266_p0), %s804_s6, %s439_s21 }
  0x27   : > { %268 = sbr.rel (!%p266_p0) target bundleno = 34 (0x22), region = 92  ;;  %319 = vperm.xlu1 (%p266_p0), %507, %v316_v5   ;;  %v509_v26 = vld [vmem:[%s802_s4] ss:$0 sm:$0xff] (%p266_p0)  ;;  %s339_s16 = sshll.u32 (%p266_p0), %s335_s13, 4  ;;  %s340_s16 = int_to_ptr.hbm [resolvable:$true] %s339_s16 }
  0x28   : > { %v510_v29 = vld [vmem:[%s803_s5] ss:$0 sm:$0xff] (%p266_p0) }
  0x29   : >> { %s272_s18 = scalar_lea.vmem [#allocation5], %s271_s17  ;;  %s325_s17 = scalar_lea.sflag (%p266_p0), [#allocation7], %s252_s19 }
  0x2a   : >> { %v273_v0 = vld [vmem:[%s272_s18] sm:$0x1]  ;;  %s571_s18 = sshra.s32 (%p266_p0), %s340_s16, 4  ;;  %s572_s18 = int_to_ptr.hbm [resolvable:$true] %s571_s18 }
  0x2b   : >> { %275 = vst [vmem:[%s274_s22] sm:$0x1] %v273_v0  ;;  %s573_s0 = scalar_lea.hbm (%p266_p0), %s572_s18, 8  ;;  %p578_p4 = scmp.lt.s32.totalorder (%p266_p0), %s572_s18, %s804_s6 }
  0x2c   : > { %v512_v7 = vpop.eup %511  ;;  %p574_p1 = scmp.ne.s32.totalorder %s572_s18, %s573_s0  ;;  %p579_p7 = scmp.lt.s32.totalorder %s577_s23, %s573_s0 }
  0x2d   : > { %v282_v8 = vmul.f32 128.0, %v512_v7  ;;  %vm286_vm0 = vweird.f32 %v512_v7 }
  0x2e   : > { %p575_p2 = pnand %p574_p1, %p717_p5  ;;  %p580_p8 = por %p579_p7, %p578_p4 }
  0x2f   : > { %v283_v9 = vsub.f32 1.0, %v282_v8 }
  0x30   : > { %p576_p3 = pneg %p575_p2 }
  0x31   : > { %v284_v10 = vmul.f32 %v512_v7, %v283_v9 }
  0x32   : > { %v276_v1 = vld [vmem:[#allocation2] sm:$0xff]  ;;  %p581_p9 = pnand %p580_p8, %p576_p3 }
  0x33   : > { %v278_v3 = vadd.f32 %v277_v2, %v276_v1  ;;  %v285_v11 = vadd.f32 %v512_v7, %v284_v10 }
  0x35   : > { %279 = vadd.xlane.f32.xlu0 %v278_v3  ;;  %v287_v12 = vsel %vm286_vm0, %v512_v7, %v285_v11 }
  0x99   : > { %v320_v31 = vpop.permute.xlu1 %319 }
  0xa8   : > { %v280_v13 = vpop.xlane.xlu0 %279 }
  0xa9   : > { %v288_v14 = vmul.f32 %v287_v12, %v280_v13 }
  0xab   : > { %v289_v15 = vsub.f32 %v278_v3, %v288_v14 }
  0xad   : > { %v290_v16 = vmul.f32 %v289_v15, %v289_v15 }
  0xaf   : > { %291 = vadd.xlane.f32.xlu0 %v290_v16 }
 0x122   : > { %v292_v17 = vpop.xlane.xlu0 %291 }
 0x123   : > { %v293_v18 = vmul.f32 %v292_v17, %v287_v12 }
 0x125   : > { %v294_v19 = vadd.f32 1e-05, %v293_v18 }
 0x127   : > { %513 = vrsqrt.f32 %v294_v19  ;;  %vm301_vm2 = vweird.f32 %v294_v19 }
 0x12d   : > { %v514_v20 = vpop.eup %513 }
 0x12e   : > { %v296_v21 = vmul.f32 %v514_v20, %v294_v19  ;;  %vm302_vm1 = vweird.f32 %v514_v20 }
 0x12f   : > { %vm303_vm3 = vmor %vm301_vm2, %vm302_vm1 }
 0x130   : > { %v297_v22 = vmul.f32 %v514_v20, %v296_v21 }
 0x132   : > { %v298_v23 = vmul.f32 0.5, %v297_v22 }
 0x134   : > { %v299_v24 = vsub.f32 1.5, %v298_v23 }
 0x136   : > { %v300_v25 = vmul.f32 %v514_v20, %v299_v24 }
 0x138   : > { %v304_v27 = vsel %vm303_vm3, %v514_v20, %v300_v25 }
 0x139   : > { %v305_v28 = vmul.f32 %v304_v27, %v289_v15 }
 0x13b   : > { %v310_v30 = vmul.f32 %v509_v26, %v305_v28 }
 0x13d   : > { %v315_v32 = vadd.f32 %v510_v29, %v310_v30 }
 0x13f   : > { %v322_v33 = vmul.f32 %v320_v31, %v315_v32 }
 0x141   : > { %323 = vst [vmem:[%s254_s14] sm:$0xff] %v322_v33 }
 0x142   : > { %584 = shalt.err (!%p581_p9)
}
 0x143   : > { %448 = dma.vmem_to_hbm [thread:$0]  (%p717_p5), %s338_s15, 128, %s340_s16, %s325_s17  }
 0x144 PF: > { %p460_p10 = scmp.ge.s32.totalorder %s629_s28, 2  ;;  %s351_s19 = sand.u32 1, %s617_s25  }
 0x145   : > { %s352_s20 = scalar_lea.sflag [#allocation7], %s351_s19 }
 0x146   : > { %p455_p11 = pnand %p460_p10, %p721_p6 }
 0x148   : > { %p456_p12 = pneg %p455_p11 }
 0x14a   : > { %612 = dma.done.wait (%p456_p12), %s352_s20, 128  }
 0x14b   : > { %614 = vsyncadd (%p456_p12), %s352_s20, 4294967168  ;;  %p25_p13 = scmp.ge.s32.totalorder %s704_s30, 4   ;;  %s807_s25 = smov %s621_s26 }
 0x14c   : > { %s808_s26 = smov %s625_s27  ;;  %s809_s27 = smov %s715_s9 }
 0x14d   : > { %s810_s28 = smov %s704_s30  ;;  %27 = sbr.rel (!%p25_p13) target bundleno = 10 (0xa), region = 103 }
 0x152   :  { %358 = vsyncpa [#allocation6], 1 }
 0x153   :  { %360 = vsyncpa [#allocation6 + $0x1], 1 }
 0x154   :  { %361 = vsyncpa [#allocation7], 1 }
 0x155   :  { %363 = vsyncpa [#allocation7 + $0x1], 1 }

</bundles_post_ra>
